<compile_context>
chip_gen: v6e
topology: v6e:2x2x1
jax: 0.10.0
libtpu: 0.0.40
codegen_flags: <defaults>
</compile_context>

<pallas_src>
from functools import lru_cache, partial

import jax
import jax.numpy as jnp
from jax.experimental import pallas as pl
from jax.experimental.pallas import tpu as pltpu

_DEF_TM = 512


def _round_up(x, m):
    return ((x + m - 1) // m) * m


# ---------------------------------------------------------------------------
# Generation-aware budgets / topology (best-effort, safe fallbacks)
# ---------------------------------------------------------------------------
@lru_cache(maxsize=None)
def _vmem_capacity_bytes():
    try:
        return int(pltpu.get_tpu_info().vmem_capacity_bytes)
    except Exception:
        return 64 * 2**20          # conservative: v7x per-TensorCore VMEM


def _budget_bytes():
    # Working-set cap: ~30% headroom for compiler temporaries / regalloc.
    return int(0.70 * _vmem_capacity_bytes())


def _vmem_limit_bytes():
    return int(0.85 * _vmem_capacity_bytes())


@lru_cache(maxsize=None)
def _num_tensorcores():
    try:
        dev = jax.devices()[0]
        for attr in ("num_cores", "core_count", "num_tensorcores"):
            v = getattr(dev, attr, None)
            if isinstance(v, int) and v > 0:
                return v
    except Exception:
        pass
    return 1


# ---------------------------------------------------------------------------
# Kernel bodies
# ---------------------------------------------------------------------------
def _gauss_kernel(xr_ref, xi_ref, wr_ref, wi_ref, br_ref, bi_ref,
                  or_ref, oi_ref):
    """Gauss 3-matmul complex product; Wr+Wi built in-kernel (no HBM stream).

    real = xr@Wr - xi@Wi + (br - bi)
    imag = (xr+xi)@(Wr+Wi) - xr@Wr - xi@Wi + (br + bi)
    Note: the imag path cancels in low precision — keep f32 compute for
    tight tolerances (bf16 is opt-in).
    """
    xr = xr_ref[...]
    xi = xi_ref[...]
    wr = wr_ref[...]
    wi = wi_ref[...]
    t1 = jnp.dot(xr, wr, preferred_element_type=jnp.float32)
    t2 = jnp.dot(xi, wi, preferred_element_type=jnp.float32)
    t3 = jnp.dot(xr + xi, wr + wi, preferred_element_type=jnp.float32)
    or_ref[...] = ((t1 - t2) + br_ref[...]).astype(or_ref.dtype)
    oi_ref[...] = ((t3 - t1 - t2) + bi_ref[...]).astype(oi_ref.dtype)


def _stacked_kernel(xs_ref, w_ref, b_ref, o_ref):
    """Single-matmul path for shallow K: [xr|xi] @ [[Wr,Wi],[-Wi,Wr]]."""
    o_ref[...] = (jnp.dot(xs_ref[...], w_ref[...],
                          preferred_element_type=jnp.float32)
                  + b_ref[...]).astype(o_ref.dtype)


# ---------------------------------------------------------------------------
# Tile selection (static, VMEM-budget aware)
# ---------------------------------------------------------------------------
def _pick_tiles_gauss(M, K, Np, itemsize):
    sub = 8 if itemsize >= 4 else 16          # sublane packing (f32 / bf16)
    budget = _budget_bytes()
    tm_cap = min(_DEF_TM, _round_up(M, sub))
    tm_floor = min(tm_cap, max(sub, 256))

    def est(tm, tn):
        acts = 2 * 2 * tm * K * itemsize          # xr, xi (double-buffered)
        wts = 2 * 2 * K * tn * itemsize           # Wr, Wi (double-buffered)
        outs = 2 * 2 * tm * tn * 4                # two f32 output tiles
        temps = (3 * tm * tn * 4                  # t1, t2, t3
                 + 2 * tm * K * itemsize          # loaded xr/xi + xr+xi temp
                 + K * tn * itemsize)             # Wr+Wi temp
        bias = 2 * 2 * tn * 4
        return acts + wts + outs + temps + bias

    best = (sub, 128)
    tn = Np
    while True:
        tm = tm_cap
        while tm > sub and est(tm, tn) > budget:
            tm = max(sub, _round_up(tm // 2, sub))
        if est(tm, tn) <= budget:
            best = (tm, tn)
            if tm >= tm_floor:
                break
        if tn <= 128:
            break
        tn = max(128, _round_up(tn // 2, 128))
    tm, tn = best

    # Core-aware split: only on multi-TC parts, only while tiles stay >= 256.
    ncores = _num_tensorcores()
    if ncores > 1:
        while (pl.cdiv(Np, tn) * pl.cdiv(M, tm) < 2 * ncores
               and tm // 2 >= max(sub, 256)):
            tm = _round_up(tm // 2, sub)
    return tm, tn


def _pick_tm_stacked(M, K, Np, itemsize):
    sub = 8 if itemsize >= 4 else 16
    budget = _budget_bytes()
    N2 = 2 * Np

    def est(tm):
        acts = 2 * tm * 2 * K * itemsize          # xs (double-buffered)
        wts = 2 * 2 * K * N2 * itemsize           # stacked W (double-buffered)
        outs = 2 * tm * N2 * 4                    # f32 output (double-buffered)
        temps = tm * N2 * 4                       # matmul result pre-bias
        bias = 2 * N2 * 4
        return acts + wts + outs + temps + bias

    tm = min(_DEF_TM, _round_up(M, sub))
    while tm > sub and est(tm) > budget:
        tm = max(sub, _round_up(tm // 2, sub))

    ncores = _num_tensorcores()
    if ncores > 1:
        while pl.cdiv(M, tm) < 2 * ncores and tm // 2 >= max(sub, 256):
            tm = _round_up(tm // 2, sub)
    return tm


# ---------------------------------------------------------------------------
# Jitted forward wrappers (de-interleave / epilogue fuse with the kernel)
# ---------------------------------------------------------------------------
@partial(jax.jit, static_argnames=("out_features",))
def _gauss_forward(x2d, wr_p, wi_p, br_p, bi_p, *, out_features):
    M, K = x2d.shape
    Np = wr_p.shape[1]
    cdt = wr_p.dtype
    itemsize = jnp.dtype(cdt).itemsize

    xr = jnp.real(x2d).astype(cdt)
    xi = jnp.imag(x2d).astype(cdt)

    tm, tn = _pick_tiles_gauss(M, K, Np, itemsize)
    grid = (pl.cdiv(Np, tn), pl.cdiv(M, tm))      # N outer, M inner:
    #                                               weight blocks fetched once
    #                                               per N block.
    out_r, out_i = pl.pallas_call(
        _gauss_kernel,
        out_shape=(jax.ShapeDtypeStruct((M, Np), jnp.float32),
                   jax.ShapeDtypeStruct((M, Np), jnp.float32)),
        grid_spec=pltpu.PrefetchScalarGridSpec(
            num_scalar_prefetch=0,
            grid=grid,
            in_specs=[
                pl.BlockSpec((tm, K), lambda j, i: (i, 0)),    # xr tile
                pl.BlockSpec((tm, K), lambda j, i: (i, 0)),    # xi tile
                pl.BlockSpec((K, tn), lambda j, i: (0, j)),    # Wr block
                pl.BlockSpec((K, tn), lambda j, i: (0, j)),    # Wi block
                pl.BlockSpec((1, tn), lambda j, i: (0, j)),    # br - bi
                pl.BlockSpec((1, tn), lambda j, i: (0, j)),    # br + bi
            ],
            out_specs=[
                pl.BlockSpec((tm, tn), lambda j, i: (i, j)),
                pl.BlockSpec((tm, tn), lambda j, i: (i, j)),
            ],
        ),
        compiler_params=pltpu.CompilerParams(
            dimension_semantics=("parallel", "parallel"),
            vmem_limit_bytes=_vmem_limit_bytes(),
        ),
    )(xr, xi, wr_p, wi_p, br_p, bi_p)

    return jax.lax.complex(out_r[:, :out_features], out_i[:, :out_features])


@partial(jax.jit, static_argnames=("out_features", "np_pad"))
def _stacked_forward(x2d, w_stacked, b_stacked, *, out_features, np_pad):
    M, K = x2d.shape
    cdt = w_stacked.dtype
    itemsize = jnp.dtype(cdt).itemsize

    xs = jnp.concatenate(
        [jnp.real(x2d).astype(cdt), jnp.imag(x2d).astype(cdt)], axis=-1)

    tm = _pick_tm_stacked(M, K, np_pad, itemsize)
    out = pl.pallas_call(
        _stacked_kernel,
        out_shape=jax.ShapeDtypeStruct((M, 2 * np_pad), jnp.float32),
        grid_spec=pltpu.PrefetchScalarGridSpec(
            num_scalar_prefetch=0,
            grid=(pl.cdiv(M, tm),),
            in_specs=[
                pl.BlockSpec((tm, 2 * K), lambda i: (i, 0)),        # [xr|xi]
                pl.BlockSpec((2 * K, 2 * np_pad), lambda i: (0, 0)),  # W (res.)
                pl.BlockSpec((1, 2 * np_pad), lambda i: (0, 0)),      # bias
            ],
            out_specs=pl.BlockSpec((tm, 2 * np_pad), lambda i: (i, 0)),
        ),
        compiler_params=pltpu.CompilerParams(
            dimension_semantics=("parallel",),
            vmem_limit_bytes=_vmem_limit_bytes(),
        ),
    )(xs, w_stacked, b_stacked)

    real = out[:, :out_features]
    imag = out[:, np_pad:np_pad + out_features]
    return jax.lax.complex(real, imag)


# ---------------------------------------------------------------------------
# Module wrapper
# ---------------------------------------------------------------------------
class ComplexLinearPallas:
    """Pallas port of the PyTorch ComplexLinear module."""

    def __init__(self, in_features, out_features, bias=True, *,
                 compute_dtype=jnp.float32, key=None):
        self.in_features = in_features
        self.out_features = out_features
        self.compute_dtype = compute_dtype

        if key is None:
            key = jax.random.PRNGKey(0)
        k1, k2, k3, k4 = jax.random.split(key, 4)
        bound = 1.0 / (in_features ** 0.5)
        # PyTorch nn.Linear layout: weight (out, in), bias (out,)
        self.w_real = jax.random.uniform(k1, (out_features, in_features),
                                         jnp.float32, -bound, bound)
        self.w_imag = jax.random.uniform(k2, (out_features, in_features),
                                         jnp.float32, -bound, bound)
        if bias:
            self.b_real = jax.random.uniform(k3, (out_features,), jnp.float32,
                                             -bound, bound)
            self.b_imag = jax.random.uniform(k4, (out_features,), jnp.float32,
                                             -bound, bound)
        else:
            self.b_real = jnp.zeros((out_features,), jnp.float32)
            self.b_imag = jnp.zeros((out_features,), jnp.float32)

        # --- kernel-side constants, prepared once (hoisted out of the kernel)
        Np = _round_up(out_features, 128)            # lane-dense output width
        self._Np = Np
        itemsize = jnp.dtype(compute_dtype).itemsize
        pad_n = ((0, 0), (0, Np - out_features))
        wr = jnp.pad(self.w_real.T, pad_n)           # (K, Np)
        wi = jnp.pad(self.w_imag.T, pad_n)           # (K, Np)
        br = jnp.pad(self.b_real, (0, Np - out_features))
        bi = jnp.pad(self.b_imag, (0, Np - out_features))
        b_re = (br - bi).reshape(1, Np).astype(jnp.float32)   # real-part bias
        b_im = (br + bi).reshape(1, Np).astype(jnp.float32)   # imag-part bias

        # Path selection: stacked single matmul when the contraction is
        # shallow (K <= 128, MXU depth-starved and DMA/latency bound) and the
        # stacked weight comfortably fits; Gauss 3-matmul otherwise.
        stacked_w_bytes = 2 * (2 * in_features) * (2 * Np) * itemsize
        self._use_stacked = (in_features <= 128
                             and stacked_w_bytes <= _budget_bytes() // 4)

        if self._use_stacked:
            top = jnp.concatenate([wr, wi], axis=1)            # (K, 2Np)
            bot = jnp.concatenate([-wi, wr], axis=1)           # (K, 2Np)
            self._w_stacked = jnp.concatenate([top, bot],
                                              axis=0).astype(compute_dtype)
            self._b_stacked = jnp.concatenate([b_re, b_im], axis=1)  # (1, 2Np)
        else:
            self._wr = wr.astype(compute_dtype)
            self._wi = wi.astype(compute_dtype)
            self._b_re = b_re
            self._b_im = b_im

    def __call__(self, x):
        """x: (..., in_features) complex64 -> (..., out_features) complex64."""
        *lead, K = x.shape
        assert K == self.in_features
        x2d = x.reshape(-1, K)

        if self._use_stacked:
            out2d = _stacked_forward(x2d, self._w_stacked, self._b_stacked,
                                     out_features=self.out_features,
                                     np_pad=self._Np)
        else:
            out2d = _gauss_forward(x2d, self._wr, self._wi,
                                   self._b_re, self._b_im,
                                   out_features=self.out_features)
        return out2d.reshape(*lead, self.out_features)


# ---------------------------------------------------------------------------
# Pure-JAX reference for correctness check
# ---------------------------------------------------------------------------
def _reference(mod, x):
    xr = jnp.real(x).astype(jnp.float32)
    xi = jnp.imag(x).astype(jnp.float32)

    def lin(v, w, b):
        return v @ w.T + b

    real = lin(xr, mod.w_real, mod.b_real) - lin(xi, mod.w_imag, mod.b_imag)
    imag = lin(xi, mod.w_real, mod.b_real) + lin(xr, mod.w_imag, mod.b_imag)
    return jax.lax.complex(real, imag)


if __name__ == "__main__":
    key = jax.random.PRNGKey(0)
    kx, kp, kp2 = jax.random.split(key, 3)

    # --- stacked single-matmul path (K <= 128): batch=2, seq=8, 32 -> 32
    B, S, Fin, Fout = 2, 8, 32, 32
    xr = jax.random.normal(kx, (B, S, Fin), jnp.float32)
    xi = jax.random.normal(jax.random.fold_in(kx, 1), (B, S, Fin), jnp.float32)
    x = jax.lax.complex(xr, xi)                       # complex64

    mod = ComplexLinearPallas(Fin, Fout, bias=True, key=kp)
    out = jax.block_until_ready(mod(x))
    ref = _reference(mod, x)
    assert out.shape == ref.shape == (B, S, Fout)
    assert out.dtype == jnp.complex64
    assert jnp.allclose(out, ref, atol=1e-4, rtol=1e-4)

    # ragged-M path (M=5 not a multiple of the tile) — masked last block.
    x2 = jax.lax.complex(
        jax.random.normal(jax.random.fold_in(kx, 2), (5, Fin), jnp.float32),
        jax.random.normal(jax.random.fold_in(kx, 3), (5, Fin), jnp.float32))
    out2 = jax.block_until_ready(mod(x2))
    ref2 = _reference(mod, x2)
    assert out2.shape == (5, Fout)
    assert jnp.allclose(out2, ref2, atol=1e-4, rtol=1e-4)

    # --- Gauss 3-matmul path (K > 128, Wr+Wi built in-kernel, padded N)
    Fin2, Fout2 = 256, 192
    x3 = jax.lax.complex(
        jax.random.normal(jax.random.fold_in(kx, 4), (4, 16, Fin2),
                          jnp.float32),
        jax.random.normal(jax.random.fold_in(kx, 5), (4, 16, Fin2),
                          jnp.float32))
    mod2 = ComplexLinearPallas(Fin2, Fout2, bias=True, key=kp2)
    assert not mod2._use_stacked
    out3 = jax.block_until_ready(mod2(x3))
    ref3 = _reference(mod2, x3)
    assert out3.shape == (4, 16, Fout2)
    assert out3.dtype == jnp.complex64
    assert jnp.allclose(out3, ref3, atol=1e-3, rtol=1e-3)

    print("KERNEL_OK")
</pallas_src>

<mosaic_0001>
module attributes {stable_mosaic.version = 11 : i64} {
  func.func @_stacked_kernel(%arg0: i32, %arg1: memref<16x64xf32, #tpu.memory_space<vmem>>, %arg2: memref<64x256xf32, #tpu.memory_space<vmem>>, %arg3: memref<1x256xf32, #tpu.memory_space<vmem>>, %arg4: memref<16x256xf32, #tpu.memory_space<vmem>>) attributes {dimension_semantics = [#tpu.dimension_semantics<parallel>], iteration_bounds = array<i64: 1>, scalar_prefetch = 0 : i64, scratch_operands = 0 : i64, tpu.core_type = #tpu.core_type<tc>, window_params = [{transform_indices = @transform_0, window_bounds = array<i64: 16, 64>}, {pipeline_mode = #tpu.pipeline_mode<synchronous>, transform_indices = @transform_1, window_bounds = array<i64: 64, 256>}, {pipeline_mode = #tpu.pipeline_mode<synchronous>, transform_indices = @transform_2, window_bounds = array<i64: 1, 256>}, {transform_indices = @transform_3, window_bounds = array<i64: 16, 256>}]} {
    %c0 = arith.constant 0 : index
    %c0_0 = arith.constant 0 : index
    %0 = vector.load %arg1[%c0, %c0_0] : memref<16x64xf32, #tpu.memory_space<vmem>>, vector<16x64xf32>
    %c0_1 = arith.constant 0 : index
    %c0_2 = arith.constant 0 : index
    %1 = vector.load %arg2[%c0_1, %c0_2] : memref<64x256xf32, #tpu.memory_space<vmem>>, vector<64x256xf32>
    %cst = arith.constant dense<0.000000e+00> : vector<16x256xf32>
    %2 = tpu.matmul %0, %1, %cst {dimension_numbers = #tpu.dot_dimension_numbers<[1], [0], [0], [1], [0, 0, 1, 1], [], []>} : vector<16x64xf32>, vector<64x256xf32>, vector<16x256xf32> -> vector<16x256xf32>
    %c0_3 = arith.constant 0 : index
    %c0_4 = arith.constant 0 : index
    %3 = vector.load %arg3[%c0_3, %c0_4] : memref<1x256xf32, #tpu.memory_space<vmem>>, vector<1x256xf32>
    %4 = vector.broadcast %3 : vector<1x256xf32> to vector<16x256xf32>
    %5 = arith.addf %2, %4 : vector<16x256xf32>
    %c0_5 = arith.constant 0 : index
    %c0_6 = arith.constant 0 : index
    %6 = vector.load %arg4[%c0_5, %c0_6] : memref<16x256xf32, #tpu.memory_space<vmem>>, vector<16x256xf32>
    tpu.vector_store %arg4[%c0_5, %c0_6], %5 {strides = array<i32>} : memref<16x256xf32, #tpu.memory_space<vmem>>, vector<16x256xf32>,
    return
  }
  func.func @transform_0(%arg0: i32) -> (i32, i32) {
    %c0_i32 = arith.constant 0 : i32
    %c0_i32_0 = arith.constant 0 : i32
    return %arg0, %c0_i32 : i32, i32
  }
  func.func @transform_1(%arg0: i32) -> (i32, i32) {
    %c0_i32 = arith.constant 0 : i32
    %c0_i32_0 = arith.constant 0 : i32
    %c0_i32_1 = arith.constant 0 : i32
    return %c0_i32, %c0_i32_0 : i32, i32
  }
  func.func @transform_2(%arg0: i32) -> (i32, i32) {
    %c0_i32 = arith.constant 0 : i32
    %c0_i32_0 = arith.constant 0 : i32
    %c0_i32_1 = arith.constant 0 : i32
    return %c0_i32, %c0_i32_0 : i32, i32
  }
  func.func @transform_3(%arg0: i32) -> (i32, i32) {
    %c0_i32 = arith.constant 0 : i32
    %c0_i32_0 = arith.constant 0 : i32
    return %arg0, %c0_i32 : i32, i32
  }
}

</mosaic_0001>

<bundles_post_ra>
// kernel: custom-call.1
= control target key start
LH: loop header
LB: loop body
LE: loop exit
PB: predicated region body
PF: predicated region fallthrough
CT: control target
= control target key end

     0   :  { %s51_s0 = inlined_call_operand.hbm [shape: c64[16,32], index: 0, kind: input, shape index: {}]   ;;  %s52_s1 = inlined_call_operand.vmem [shape: f32[16,32], index: 1, kind: output, shape index: {}]  }
   0x1   :  { %s2_s8 = scalar_lea.hbm %s51_s0, 256 }
   0x2   :  { %3 = vsyncpa [#allocation0], 0  ;;  %s4_s11 = sshll.u32 %s52_s1, 4  ;;  %s5_s11 = int_to_ptr.vmem [resolvable:$true] %s4_s11 }
   0x3   :  { %s20_s12 = scalar_lea.vmem %s5_s11, 256  ;;  %p25_p1 = scmp.lt.s32.totalorder %s5_s11, %s5_s11 }
   0x4   :  { %p21_p0 = scmp.ne.s32.totalorder %s5_s11, %s20_s12  ;;  %p26_p2 = scmp.lt.s32.totalorder %s20_s12, %s20_s12 }
   0x6   :  { %p27_p3 = por %p26_p2, %p25_p1 }
   0x8   :  { %p28_p4 = pnand %p27_p3, %p21_p0 }
   0xa   :  { %31 = shalt.err (!%p28_p4)  }
   0xb   :  { %7 = dma.hbm_to_vmem [thread:$0]  %s2_s8, 256, %s5_s11, [#allocation0] }
   0xc   :  { %33 = dma.done.wait [#allocation0], 256  }
   0xd   :  { %34 = vsyncadd [#allocation0], 4294967040 }
   0xe   :  { %9 = vsyncpa [#allocation0], 1 }

// kernel: custom-call
= control target key start
LH: loop header
LB: loop body
LE: loop exit
PB: predicated region body
PF: predicated region fallthrough
CT: control target
= control target key end

     0   :  { %2 = vsyncpa [#allocation0], 0  ;;  %s47_s0 = inlined_call_operand.hbm [shape: c64[16,32], index: 0, kind: input, shape index: {}]   ;;  %s48_s1 = inlined_call_operand.vmem [shape: f32[16,32], index: 1, kind: output, shape index: {}]  }
   0x1   :  { %s3_s8 = sshll.u32 %s48_s1, 4  ;;  %s4_s8 = int_to_ptr.vmem [resolvable:$true] %s3_s8 }
   0x2   :  { %s17_s9 = scalar_lea.vmem %s4_s8, 256  ;;  %p22_p1 = scmp.lt.s32.totalorder %s4_s8, %s4_s8 }
   0x3   :  { %p18_p0 = scmp.ne.s32.totalorder %s4_s8, %s17_s9  ;;  %p23_p2 = scmp.lt.s32.totalorder %s17_s9, %s17_s9 }
   0x5   :  { %p24_p3 = por %p23_p2, %p22_p1 }
   0x7   :  { %p25_p4 = pnand %p24_p3, %p18_p0 }
   0x9   :  { %28 = shalt.err (!%p25_p4)  }
   0xa   :  { %6 = dma.hbm_to_vmem [thread:$0]  %s47_s0, 256, %s4_s8, [#allocation0] }
   0xb   :  { %29 = dma.done.wait [#allocation0], 256  }
   0xc   :  { %30 = vsyncadd [#allocation0], 4294967040 }
   0xd   :  { %8 = vsyncpa [#allocation0], 1 }

// kernel: custom-call.2
= control target key start
LH: loop header
LB: loop body
LE: loop exit
PB: predicated region body
PF: predicated region fallthrough
CT: control target
= control target key end

     0   :  { %s92_s0 = inlined_call_operand.vmem [shape: f32[16,32], index: 0, kind: input, shape index: {}]   ;;  %s93_s1 = inlined_call_operand.vmem [shape: f32[16,32], index: 1, kind: input, shape index: {}]   ;;  %s94_s2 = inlined_call_operand.hbm [shape: c64[16,32], index: 2, kind: output, shape index: {}]  }
   0x1   :  { %s3_s11 = scalar_lea.hbm %s94_s2, 256 }
   0x2   :  { %4 = vsyncpa [#allocation0], 0  ;;  %s5_s14 = sshll.u32 %s92_s0, 4  ;;  %s6_s14 = int_to_ptr.vmem [resolvable:$true] %s5_s14 }
   0x3   :  { %s18_s15 = scalar_lea.vmem %s6_s14, 256  ;;  %p23_p1 = scmp.lt.s32.totalorder %s6_s14, %s6_s14 }
   0x4   :  { %p19_p0 = scmp.ne.s32.totalorder %s6_s14, %s18_s15  ;;  %p24_p2 = scmp.lt.s32.totalorder %s18_s15, %s18_s15 }
   0x6   :  { %p25_p3 = por %p24_p2, %p23_p1 }
   0x8   :  { %p26_p4 = pnand %p25_p3, %p19_p0 }
   0xa   :  { %29 = shalt.err (!%p26_p4)  }
   0xb   :  { %8 = dma.vmem_to_hbm [thread:$0]  %s6_s14, 256, %s94_s2, [#allocation0] }
   0xc   :  { %61 = dma.done.wait [#allocation0], 256  }
   0xd   :  { %62 = vsyncadd [#allocation0], 4294967040 }
   0xe   :  { %10 = vsyncpa [#allocation0], 1 }
   0xf   :  { %11 = vsyncpa [#allocation1], 0  ;;  %s12_s0 = sshll.u32 %s93_s1, 4  ;;  %s13_s0 = int_to_ptr.vmem [resolvable:$true] %s12_s0 }
  0x10   :  { %s38_s20 = scalar_lea.vmem %s13_s0, 256  ;;  %p43_p6 = scmp.lt.s32.totalorder %s13_s0, %s13_s0 }
  0x11   :  { %p39_p5 = scmp.ne.s32.totalorder %s13_s0, %s38_s20  ;;  %p44_p7 = scmp.lt.s32.totalorder %s38_s20, %s38_s20 }
  0x13   :  { %p45_p8 = por %p44_p7, %p43_p6 }
  0x15   :  { %p46_p9 = pnand %p45_p8, %p39_p5 }
  0x17   :  { %49 = shalt.err (!%p46_p9)  }
  0x18   :  { %15 = dma.vmem_to_hbm [thread:$0]  %s13_s0, 256, %s3_s11, [#allocation1] }
  0x19   :  { %63 = dma.done.wait [#allocation1], 256  }
  0x1a   :  { %64 = vsyncadd [#allocation1], 4294967040 }
  0x1b   :  { %17 = vsyncpa [#allocation1], 1 }

// kernel: _stacked_forward.1
= control target key start
LH: loop header
LB: loop body
LE: loop exit
PB: predicated region body
PF: predicated region fallthrough
CT: control target
= control target key end

     0   :  { %8 = vsyncpa [#allocation3], 0  ;;  %s195_s12 = smov [#allocation2]   ;;  %s243_s0 = inlined_call_operand.vmem [shape: f32[16,64], index: 0, kind: input, shape index: {}]   ;;  %s244_s1 = inlined_call_operand.hbm [shape: f32[64,256], index: 1, kind: input, shape index: {}]   ;;  %s245_s2 = inlined_call_operand.vmem [shape: f32[1,256], index: 2, kind: input, shape index: {}]   ;;  %s246_s3 = inlined_call_operand.vmem [shape: f32[16,256], index: 3, kind: output, shape index: {}]  }
   0x1   :  { %s16_s13 = sshll.u32 %s195_s12, 4  ;;  %s17_s13 = int_to_ptr.vmem [resolvable:$true] %s16_s13 }
   0x2   :  { %s181_s14 = scalar_lea.vmem %s17_s13, 2048  ;;  %p186_p1 = scmp.lt.s32.totalorder %s17_s13, %s17_s13 }
   0x3   :  { %p182_p0 = scmp.ne.s32.totalorder %s17_s13, %s181_s14  ;;  %p187_p2 = scmp.lt.s32.totalorder %s181_s14, %s181_s14 }
   0x5   :  { %p188_p3 = por %p187_p2, %p186_p1 }
   0x7   :  { %p189_p4 = pnand %p188_p3, %p182_p0 }
   0x9   :  { %192 = shalt.err (!%p189_p4)
}
   0xa   :  { %s196_s15 = smov 256   ;;  %s197_s16 = smov 16  }
   0xb   :  { %22 = dma.hbm_to_vmem [thread:$0]  %s244_s1, 2048, %s17_s13, [#allocation3], %s196_s15, %s196_s15, %s197_s16  }
   0xc   :  { %193 = dma.done.wait [#allocation3], 2048  }
   0xd   :  { %194 = vsyncadd [#allocation3], 4294965248  ;;  %v198_v0 = vmov 0.0   ;;  %v45_v1 = vld [vmem:[#allocation2 + $0x78] sm:$0xff]  ;;  %v44_v2 = vld [vmem:[#allocation2 + $0x70] sm:$0xff]  ;;  %vm58_vm0 = vcmask 523264   ;;  %v48_v19 = vlaneseq }
   0xe   :  { %129 = vmatprep.mubr.f32.mxu0 %v198_v0  ;;  %135 = vmatprep.mubr.f32.mxu1 %v198_v0  ;;  %v43_v3 = vld [vmem:[#allocation2 + $0x68] sm:$0xff]  ;;  %v42_v4 = vld [vmem:[#allocation2 + $0x60] sm:$0xff]  ;;  %v41_v5 = vld [vmem:[#allocation2 + $0x58] sm:$0xff] }
   0xf   :  { %81 = vmatprep.subr.mxu0 %v45_v1  ;;  %153 = vmatprep.subr.mxu1 %v45_v1  ;;  %v40_v6 = vld [vmem:[#allocation2 + $0x50] sm:$0xff]  ;;  %v39_v7 = vld [vmem:[#allocation2 + $0x48] sm:$0xff]  ;;  %v38_v8 = vld [vmem:[#allocation2 + $0x40] sm:$0xff]  ;;  %v49_v20 = vshrl.u32 %v48_v19, 7 }
  0x10   :  { %82 = vmatpush1.msra.mxu0 %v44_v2  ;;  %161 = vmatpush1.msra.mxu1 %v44_v2  ;;  %v37_v9 = vld [vmem:[#allocation2 + $0x38] sm:$0xff]  ;;  %v36_v10 = vld [vmem:[#allocation2 + $0x30] sm:$0xff]  ;;  %v35_v11 = vld [vmem:[#allocation2 + $0x28] sm:$0xff] }
  0x11   :  { %83 = vmatprep.subr.mxu0 %v43_v3  ;;  %154 = vmatprep.subr.mxu1 %v43_v3  ;;  %v34_v12 = vld [vmem:[#allocation2 + $0x20] sm:$0xff]  ;;  %v33_v13 = vld [vmem:[#allocation2 + $0x18] sm:$0xff]  ;;  %v32_v14 = vld [vmem:[#allocation2 + $0x10] sm:$0xff]  ;;  %v50_v21 = vsub.s32 0, %v49_v20  ;;  %v54_v23 = vsub.s32 1, %v49_v20 }
  0x12   :  { %84 = vmatpush1.msra.mxu0 %v42_v4  ;;  %162 = vmatpush1.msra.mxu1 %v42_v4  ;;  %v31_v15 = vld [vmem:[#allocation2 + $0x8] sm:$0xff]  ;;  %v30_v16 = vld [vmem:[#allocation2] sm:$0xff] }
  0x13   :  { %85 = vmatprep.subr.mxu0 %v41_v5  ;;  %155 = vmatprep.subr.mxu1 %v41_v5  ;;  %v28_v17 = vld [vmem:[%s243_s0] sm:$0xff]  ;;  %v29_v18 = vld [vmem:[%s243_s0 + $0x8] sm:$0xff] }
  0x14   :  { %86 = vmatpush1.msra.mxu0 %v40_v6  ;;  %163 = vmatpush1.msra.mxu1 %v40_v6  ;;  %v46_v22 = vld [vmem:[%s245_s2] sm:$0x3] }
  0x15   :  { %87 = vmatprep.subr.mxu0 %v39_v7  ;;  %156 = vmatprep.subr.mxu1 %v39_v7  ;;  %v51_v24 = vrot.slane %v46_v22, %v50_v21  ;;  %v55_v25 = vrot.slane %v46_v22, %v54_v23 }
  0x16   :  { %88 = vmatpush1.msra.mxu0 %v38_v8  ;;  %164 = vmatpush1.msra.mxu1 %v38_v8 }
  0x17   :  { %89 = vmatprep.subr.mxu0 %v37_v9  ;;  %157 = vmatprep.subr.mxu1 %v37_v9 }
  0x18   :  { %90 = vmatpush1.msra.mxu0 %v36_v10  ;;  %165 = vmatpush1.msra.mxu1 %v36_v10 }
  0x19   :  { %91 = vmatprep.subr.mxu0 %v35_v11  ;;  %158 = vmatprep.subr.mxu1 %v35_v11 }
  0x1a   :  { %92 = vmatpush1.msra.mxu0 %v34_v12  ;;  %166 = vmatpush1.msra.mxu1 %v34_v12 }
  0x1b   :  { %93 = vmatprep.subr.mxu0 %v33_v13  ;;  %159 = vmatprep.subr.mxu1 %v33_v13 }
  0x1c   :  { %94 = vmatpush1.msra.mxu0 %v32_v14  ;;  %167 = vmatpush1.msra.mxu1 %v32_v14 }
  0x1d   :  { %95 = vmatprep.subr.mxu0 %v31_v15  ;;  %160 = vmatprep.subr.mxu1 %v31_v15 }
  0x1e   :  { %96 = vmatpush1.msra.mxu0 %v30_v16  ;;  %168 = vmatpush1.msra.mxu1 %v30_v16 }
  0x1f   :  { %151 = vmatmul.mubr.msk.f32.vlgmr.msra.gmra.mxu0 %vm58_vm0, %v28_v17  ;;  %152 = vmatmul.mubr.msk.f32.vlgmr.msra.gmra.mxu1 %vm58_vm0, %v29_v18 }
  0xdf   :  { %v131_v26 = vpop.f32.mrf.mxu0  ;;  %v137_v27 = vpop.f32.mrf.mxu1 }
  0xe0   :  { %v132_v28 = vadd.f32 %v131_v26, %v51_v24  ;;  %v138_v29 = vadd.f32 %v137_v27, %v51_v24 }
  0xe1   :  { %v133_v30 = vpop.f32.mrf.mxu0  ;;  %v139_v31 = vpop.f32.mrf.mxu1 }
  0xe2   :  { %142 = vst [vmem:[%s246_s3] sm:$0xff] %v132_v28  ;;  %144 = vst [vmem:[%s246_s3 + $0x10] sm:$0xff] %v138_v29  ;;  %v134_v32 = vadd.f32 %v133_v30, %v55_v25  ;;  %v140_v33 = vadd.f32 %v139_v31, %v55_v25 }
  0xe4   :  { %143 = vst [vmem:[%s246_s3 + $0x8] sm:$0xff] %v134_v32  ;;  %145 = vst [vmem:[%s246_s3 + $0x18] sm:$0xff] %v140_v33 }
  0xe5   :  { %150 = vsyncpa [#allocation3], 1 }

</bundles_post_ra>
